<compile_context>
chip_gen: v5e
topology: v5e:2x2
jax: 0.10.0
libtpu: 0.0.40
codegen_flags: <defaults>
</compile_context>

<pallas_src>
import functools

import jax
import jax.numpy as jnp
from jax.experimental import pallas as pl


def encoder_block_kernel(x_ref, gamma_ref, beta_ref,
                         wq_ref, wk_ref, wv_ref, wproj_ref, bproj_ref,
                         w1_ref, b1_ref, w2_ref, b2_ref,
                         o_ref, *, batch, seq, num_heads, eps):
    # Refs (whole arrays resident in VMEM, single kernel invocation):
    #   x_ref    : (B*T, L)  batch-stacked input rows
    #   gamma/beta/bproj/b2 : (1, L)      b1 : (1, 4L)
    #   wq/wk/wv : (heads, L, H)   (wq pre-scaled by 1/sqrt(H))
    #   wproj    : (heads, H, L)
    #   w1       : (L, 4L)         w2 : (4L, L)
    #   o_ref    : (B*T, L)
    gamma = gamma_ref[...]
    beta = beta_ref[...]

    def layer_norm(z):
        mean = jnp.mean(z, axis=-1, keepdims=True)
        zc = z - mean
        var = jnp.mean(zc * zc, axis=-1, keepdims=True)
        return zc * jax.lax.rsqrt(var + eps) * gamma + beta

    # ---- attention branch: depends only on batch element 0 (module's `[0]`) ----
    x0 = x_ref[0:seq, :]                          # rows [0, T) == batch element 0
    n1 = layer_norm(x0)                           # (T, L)

    # contract the last dims of q and k -> q @ k^T with no explicit transpose
    dn = (((1,), (1,)), ((), ()))
    attn = jnp.zeros((seq, x_ref.shape[1]), jnp.float32)
    for h in range(num_heads):                    # static loop, heads is small
        q_h = jnp.dot(n1, wq_ref[h], preferred_element_type=jnp.float32)  # (T, H)
        k_h = jnp.dot(n1, wk_ref[h], preferred_element_type=jnp.float32)
        v_h = jnp.dot(n1, wv_ref[h], preferred_element_type=jnp.float32)
        s = jax.lax.dot_general(q_h, k_h, dn,
                                preferred_element_type=jnp.float32)       # (T, T)
        s = s - jnp.max(s, axis=-1, keepdims=True)
        p = jnp.exp(s)
        p = p / jnp.sum(p, axis=-1, keepdims=True)     # exact softmax (parity)
        # TODO(synk): attention dropout (p=0.1) is identity (eval mode); torch
        #             training RNG parity is not reproducible in-kernel.
        o_h = jnp.dot(p, v_h, preferred_element_type=jnp.float32)         # (T, H)
        # projection-accumulate: no lane-axis concat of head outputs
        attn = attn + jnp.dot(o_h, wproj_ref[h],
                              preferred_element_type=jnp.float32)         # (T, L)
    attn = attn + bproj_ref[...]
    # TODO(synk): multihead output-projection dropout is identity (eval mode).

    # ---- residual + LN + MLP over all B*T rows in one shot ----
    x_all = x_ref[...]                                      # (B*T, L)
    attn_b = jnp.concatenate([attn] * batch, axis=0)        # broadcast over batch
    first_added = attn_b + x_all
    n2 = layer_norm(first_added)

    h1 = (jnp.dot(n2, w1_ref[...], preferred_element_type=jnp.float32)
          + b1_ref[...])                                    # (B*T, 4L) lane-dense
    # TODO(synk): torch nn.GELU() default is the exact erf form; the tanh
    #             approximation (max abs dev ~3e-4) is used for a guaranteed
    #             Mosaic lowering.
    c = 0.7978845608028654  # sqrt(2/pi)
    h1 = 0.5 * h1 * (1.0 + jnp.tanh(c * (h1 + 0.044715 * (h1 * h1 * h1))))
    ff = (jnp.dot(h1, w2_ref[...], preferred_element_type=jnp.float32)
          + b2_ref[...])                                    # (B*T, L)
    # TODO(synk): MLP dropouts are identity (eval mode).

    o_ref[...] = (ff + first_added).astype(o_ref.dtype)


def prepare_encoder_block_params(gamma, beta, wq, wk, wv, wproj, bproj,
                                 w1, b1, w2, b2):
    """One-time weight-layout prep (run once, reuse for every forward call).

    PyTorch layouts in:
      wq/wk/wv: (heads, H, L) per-head Linear weights (no bias),
      wproj: (L, heads*H), bproj: (L,), w1: (4L, L), b1: (4L,),
      w2: (L, 4L), b2: (L,), gamma/beta: (L,).
    Kernel layouts out: (in, out) matrices, per-head weight stacks, lane-shaped
    biases, and the 1/sqrt(head_dim) attention scale folded into the q weights.
    """
    num_heads, head_dim, L = wq.shape
    L4 = w1.shape[0]
    scale = float(head_dim) ** -0.5
    return {
        "gamma": gamma.reshape(1, L),
        "beta": beta.reshape(1, L),
        "wq": jnp.transpose(wq, (0, 2, 1)) * scale,          # (heads, L, H), scaled
        "wk": jnp.transpose(wk, (0, 2, 1)),                   # (heads, L, H)
        "wv": jnp.transpose(wv, (0, 2, 1)),                   # (heads, L, H)
        "wproj": jnp.transpose(wproj, (1, 0)).reshape(num_heads, head_dim, L),
        "bproj": bproj.reshape(1, L),
        "w1": w1.T,                                           # (L, 4L)
        "b1": b1.reshape(1, L4),
        "w2": w2.T,                                           # (4L, L)
        "b2": b2.reshape(1, L),
    }


@jax.jit
def encoder_block(x, params):
    """x: (B, T, L); params from prepare_encoder_block_params.  Returns (B, T, L)."""
    B, T, L = x.shape
    num_heads = params["wq"].shape[0]
    x2 = x.reshape(B * T, L)                  # XLA-side reshape (layout plumbing)

    out2 = pl.pallas_call(
        functools.partial(encoder_block_kernel, batch=B, seq=T,
                          num_heads=num_heads, eps=1e-5),
        out_shape=jax.ShapeDtypeStruct((B * T, L), x.dtype),
        # No grid / BlockSpecs: single invocation, every operand resident whole in
        # VMEM (a few KB here).  See header comment for the real-ViT scale-up plan.
    )(x2, params["gamma"], params["beta"],
      params["wq"], params["wk"], params["wv"],
      params["wproj"], params["bproj"],
      params["w1"], params["b1"], params["w2"], params["b2"])

    return out2.reshape(B, T, L)


def encoder_block_ref(x, gamma, beta, wq, wk, wv, wproj, bproj, w1, b1, w2, b2,
                      eps=1e-5):
    """Pure-JAX reference mirroring the PyTorch forward (eval mode, exact GELU)."""
    def ln(z):
        m = jnp.mean(z, axis=-1, keepdims=True)
        v = jnp.mean((z - m) ** 2, axis=-1, keepdims=True)
        return (z - m) / jnp.sqrt(v + eps) * gamma + beta

    num_heads, head_dim, _ = wq.shape
    n1 = ln(x)
    heads_out = []
    for h in range(num_heads):
        k = n1 @ wk[h].T
        q = n1 @ wq[h].T
        v = n1 @ wv[h].T
        wei = (q @ jnp.swapaxes(k, -2, -1)) * (head_dim ** -0.5)
        wei = jax.nn.softmax(wei, axis=-1)
        heads_out.append(wei @ v)
    attn = jnp.concatenate(heads_out, axis=-1) @ wproj.T + bproj
    attention_out = attn[0]                       # the module's `[0]` indexing
    first_added = attention_out + x
    n2 = ln(first_added)
    hid = jax.nn.gelu(n2 @ w1.T + b1, approximate=False)   # torch nn.GELU default
    ff = hid @ w2.T + b2
    return ff + first_added


if __name__ == "__main__":
    # Small shapes consistent with the module: latent=32, num_heads=4, seq=8.
    B, T, L, NUM_HEADS = 2, 8, 32, 4
    H = L // NUM_HEADS
    L4 = 4 * L

    key = jax.random.PRNGKey(0)
    ks = jax.random.split(key, 12)

    x = jax.random.normal(ks[0], (B, T, L), dtype=jnp.float32)

    # LayerNorm affine params (perturbed so the affine path is actually tested).
    gamma = 1.0 + 0.1 * jax.random.normal(ks[1], (L,), dtype=jnp.float32)
    beta = 0.1 * jax.random.normal(ks[2], (L,), dtype=jnp.float32)

    def uinit(k, shape, fan_in):              # nn.Linear-style U(-1/sqrt(fan_in), .)
        b = 1.0 / (fan_in ** 0.5)
        return jax.random.uniform(k, shape, jnp.float32, -b, b)

    wq = uinit(ks[3], (NUM_HEADS, H, L), L)
    wk = uinit(ks[4], (NUM_HEADS, H, L), L)
    wv = uinit(ks[5], (NUM_HEADS, H, L), L)
    wproj = uinit(ks[6], (L, NUM_HEADS * H), NUM_HEADS * H)
    bproj = uinit(ks[7], (L,), NUM_HEADS * H)
    w1 = uinit(ks[8], (L4, L), L)
    b1 = uinit(ks[9], (L4,), L)
    w2 = uinit(ks[10], (L, L4), L4)
    b2 = uinit(ks[11], (L,), L4)

    # One-time weight prep (kept off the per-call inference path).
    params = prepare_encoder_block_params(gamma, beta, wq, wk, wv, wproj, bproj,
                                          w1, b1, w2, b2)
    params = jax.tree_util.tree_map(jax.block_until_ready, params)

    out = encoder_block(x, params)
    out = jax.block_until_ready(out)

    ref = encoder_block_ref(x, gamma, beta, wq, wk, wv, wproj, bproj, w1, b1, w2, b2)
    assert out.shape == (B, T, L), out.shape
    max_err = float(jnp.max(jnp.abs(out - ref)))
    # tolerance covers the tanh-GELU vs exact-erf GELU difference (~3e-4 pre-w2)
    assert jnp.allclose(out, ref, atol=2e-3, rtol=2e-3), max_err

    print("KERNEL_OK")
</pallas_src>

<mosaic_0001>
module attributes {stable_mosaic.version = 11 : i64} {
  func.func @encoder_block_kernel(%arg0: memref<16x32xf32, #tpu.memory_space<vmem>>, %arg1: memref<1x32xf32, #tpu.memory_space<vmem>>, %arg2: memref<1x32xf32, #tpu.memory_space<vmem>>, %arg3: memref<4x32x8xf32, #tpu.memory_space<vmem>>, %arg4: memref<4x32x8xf32, #tpu.memory_space<vmem>>, %arg5: memref<4x32x8xf32, #tpu.memory_space<vmem>>, %arg6: memref<4x8x32xf32, #tpu.memory_space<vmem>>, %arg7: memref<1x32xf32, #tpu.memory_space<vmem>>, %arg8: memref<32x128xf32, #tpu.memory_space<vmem>>, %arg9: memref<1x128xf32, #tpu.memory_space<vmem>>, %arg10: memref<128x32xf32, #tpu.memory_space<vmem>>, %arg11: memref<1x32xf32, #tpu.memory_space<vmem>>, %arg12: memref<16x32xf32, #tpu.memory_space<vmem>>) attributes {dimension_semantics = [], scalar_prefetch = 0 : i64, scratch_operands = 0 : i64, tpu.core_type = #tpu.core_type<tc>} {
    %c0 = arith.constant 0 : index
    %c0_0 = arith.constant 0 : index
    %0 = vector.load %arg1[%c0, %c0_0] : memref<1x32xf32, #tpu.memory_space<vmem>>, vector<1x32xf32>
    %c0_1 = arith.constant 0 : index
    %c0_2 = arith.constant 0 : index
    %1 = vector.load %arg2[%c0_1, %c0_2] : memref<1x32xf32, #tpu.memory_space<vmem>>, vector<1x32xf32>
    %c0_3 = arith.constant 0 : index
    %c0_4 = arith.constant 0 : index
    %2 = vector.load %arg0[%c0_3, %c0_4] : memref<16x32xf32, #tpu.memory_space<vmem>>, vector<8x32xf32>
    %cst = arith.constant dense<0.000000e+00> : vector<8xf32>
    %3 = vector.multi_reduction <add>, %2, %cst [1] : vector<8x32xf32> to vector<8xf32>
    %4 = vector.shape_cast %3 : vector<8xf32> to vector<8x1xf32>
    %cst_5 = arith.constant 3.200000e+01 : f32
    %5 = vector.broadcast %cst_5 : f32 to vector<8x1xf32>
    %6 = arith.divf %4, %5 : vector<8x1xf32>
    %7 = vector.broadcast %6 : vector<8x1xf32> to vector<8x32xf32>
    %8 = arith.subf %2, %7 : vector<8x32xf32>
    %9 = arith.mulf %8, %8 : vector<8x32xf32>
    %cst_6 = arith.constant dense<0.000000e+00> : vector<8xf32>
    %10 = vector.multi_reduction <add>, %9, %cst_6 [1] : vector<8x32xf32> to vector<8xf32>
    %11 = vector.shape_cast %10 : vector<8xf32> to vector<8x1xf32>
    %cst_7 = arith.constant 3.200000e+01 : f32
    %12 = vector.broadcast %cst_7 : f32 to vector<8x1xf32>
    %13 = arith.divf %11, %12 : vector<8x1xf32>
    %cst_8 = arith.constant 9.99999974E-6 : f32
    %14 = vector.broadcast %cst_8 : f32 to vector<8x1xf32>
    %15 = arith.addf %13, %14 : vector<8x1xf32>
    %16 = math.rsqrt %15 : vector<8x1xf32>
    %17 = vector.broadcast %16 : vector<8x1xf32> to vector<8x32xf32>
    %18 = arith.mulf %8, %17 : vector<8x32xf32>
    %19 = vector.broadcast %0 : vector<1x32xf32> to vector<8x32xf32>
    %20 = arith.mulf %18, %19 : vector<8x32xf32>
    %21 = vector.broadcast %1 : vector<1x32xf32> to vector<8x32xf32>
    %22 = arith.addf %20, %21 : vector<8x32xf32>
    %cst_9 = arith.constant 0.000000e+00 : f32
    %23 = vector.broadcast %cst_9 : f32 to vector<8x32xf32>
    %c0_10 = arith.constant 0 : index
    %c0_11 = arith.constant 0 : index
    %c0_12 = arith.constant 0 : index
    %24 = vector.load %arg3[%c0_10, %c0_11, %c0_12] : memref<4x32x8xf32, #tpu.memory_space<vmem>>, vector<1x32x8xf32>
    %25 = vector.shape_cast %24 : vector<1x32x8xf32> to vector<32x8xf32>
    %cst_13 = arith.constant dense<0.000000e+00> : vector<8x8xf32>
    %26 = tpu.matmul %22, %25, %cst_13 {dimension_numbers = #tpu.dot_dimension_numbers<[1], [0], [0], [1], [0, 0, 1, 1], [], []>} : vector<8x32xf32>, vector<32x8xf32>, vector<8x8xf32> -> vector<8x8xf32>
    %c0_14 = arith.constant 0 : index
    %c0_15 = arith.constant 0 : index
    %c0_16 = arith.constant 0 : index
    %27 = vector.load %arg4[%c0_14, %c0_15, %c0_16] : memref<4x32x8xf32, #tpu.memory_space<vmem>>, vector<1x32x8xf32>
    %28 = vector.shape_cast %27 : vector<1x32x8xf32> to vector<32x8xf32>
    %cst_17 = arith.constant dense<0.000000e+00> : vector<8x8xf32>
    %29 = tpu.matmul %22, %28, %cst_17 {dimension_numbers = #tpu.dot_dimension_numbers<[1], [0], [0], [1], [0, 0, 1, 1], [], []>} : vector<8x32xf32>, vector<32x8xf32>, vector<8x8xf32> -> vector<8x8xf32>
    %c0_18 = arith.constant 0 : index
    %c0_19 = arith.constant 0 : index
    %c0_20 = arith.constant 0 : index
    %30 = vector.load %arg5[%c0_18, %c0_19, %c0_20] : memref<4x32x8xf32, #tpu.memory_space<vmem>>, vector<1x32x8xf32>
    %31 = vector.shape_cast %30 : vector<1x32x8xf32> to vector<32x8xf32>
    %cst_21 = arith.constant dense<0.000000e+00> : vector<8x8xf32>
    %32 = tpu.matmul %22, %31, %cst_21 {dimension_numbers = #tpu.dot_dimension_numbers<[1], [0], [0], [1], [0, 0, 1, 1], [], []>} : vector<8x32xf32>, vector<32x8xf32>, vector<8x8xf32> -> vector<8x8xf32>
    %cst_22 = arith.constant dense<0.000000e+00> : vector<8x8xf32>
    %33 = tpu.matmul %26, %29, %cst_22 {dimension_numbers = #tpu.dot_dimension_numbers<[1], [1], [0], [0], [0, 0, 1, 0], [], []>} : vector<8x8xf32>, vector<8x8xf32>, vector<8x8xf32> -> vector<8x8xf32>
    %cst_23 = arith.constant dense<0xFF800000> : vector<8xf32>
    %34 = vector.multi_reduction <maximumf>, %33, %cst_23 [1] : vector<8x8xf32> to vector<8xf32>
    %35 = vector.shape_cast %34 : vector<8xf32> to vector<8x1xf32>
    %36 = vector.broadcast %35 : vector<8x1xf32> to vector<8x8xf32>
    %37 = arith.subf %33, %36 : vector<8x8xf32>
    %38 = math.exp %37 : vector<8x8xf32>
    %cst_24 = arith.constant dense<0.000000e+00> : vector<8xf32>
    %39 = vector.multi_reduction <add>, %38, %cst_24 [1] : vector<8x8xf32> to vector<8xf32>
    %40 = vector.shape_cast %39 : vector<8xf32> to vector<8x1xf32>
    %41 = vector.broadcast %40 : vector<8x1xf32> to vector<8x8xf32>
    %42 = arith.divf %38, %41 : vector<8x8xf32>
    %cst_25 = arith.constant dense<0.000000e+00> : vector<8x8xf32>
    %43 = tpu.matmul %42, %32, %cst_25 {dimension_numbers = #tpu.dot_dimension_numbers<[1], [0], [0], [1], [0, 0, 1, 1], [], []>} : vector<8x8xf32>, vector<8x8xf32>, vector<8x8xf32> -> vector<8x8xf32>
    %c0_26 = arith.constant 0 : index
    %c0_27 = arith.constant 0 : index
    %c0_28 = arith.constant 0 : index
    %44 = vector.load %arg6[%c0_26, %c0_27, %c0_28] : memref<4x8x32xf32, #tpu.memory_space<vmem>>, vector<1x8x32xf32>
    %45 = vector.shape_cast %44 : vector<1x8x32xf32> to vector<8x32xf32>
    %cst_29 = arith.constant dense<0.000000e+00> : vector<8x32xf32>
    %46 = tpu.matmul %43, %45, %cst_29 {dimension_numbers = #tpu.dot_dimension_numbers<[1], [0], [0], [1], [0, 0, 1, 1], [], []>} : vector<8x8xf32>, vector<8x32xf32>, vector<8x32xf32> -> vector<8x32xf32>
    %47 = arith.addf %23, %46 : vector<8x32xf32>
    %c1 = arith.constant 1 : index
    %c0_30 = arith.constant 0 : index
    %c0_31 = arith.constant 0 : index
    %48 = vector.load %arg3[%c1, %c0_30, %c0_31] : memref<4x32x8xf32, #tpu.memory_space<vmem>>, vector<1x32x8xf32>
    %49 = vector.shape_cast %48 : vector<1x32x8xf32> to vector<32x8xf32>
    %cst_32 = arith.constant dense<0.000000e+00> : vector<8x8xf32>
    %50 = tpu.matmul %22, %49, %cst_32 {dimension_numbers = #tpu.dot_dimension_numbers<[1], [0], [0], [1], [0, 0, 1, 1], [], []>} : vector<8x32xf32>, vector<32x8xf32>, vector<8x8xf32> -> vector<8x8xf32>
    %c1_33 = arith.constant 1 : index
    %c0_34 = arith.constant 0 : index
    %c0_35 = arith.constant 0 : index
    %51 = vector.load %arg4[%c1_33, %c0_34, %c0_35] : memref<4x32x8xf32, #tpu.memory_space<vmem>>, vector<1x32x8xf32>
    %52 = vector.shape_cast %51 : vector<1x32x8xf32> to vector<32x8xf32>
    %cst_36 = arith.constant dense<0.000000e+00> : vector<8x8xf32>
    %53 = tpu.matmul %22, %52, %cst_36 {dimension_numbers = #tpu.dot_dimension_numbers<[1], [0], [0], [1], [0, 0, 1, 1], [], []>} : vector<8x32xf32>, vector<32x8xf32>, vector<8x8xf32> -> vector<8x8xf32>
    %c1_37 = arith.constant 1 : index
    %c0_38 = arith.constant 0 : index
    %c0_39 = arith.constant 0 : index
    %54 = vector.load %arg5[%c1_37, %c0_38, %c0_39] : memref<4x32x8xf32, #tpu.memory_space<vmem>>, vector<1x32x8xf32>
    %55 = vector.shape_cast %54 : vector<1x32x8xf32> to vector<32x8xf32>
    %cst_40 = arith.constant dense<0.000000e+00> : vector<8x8xf32>
    %56 = tpu.matmul %22, %55, %cst_40 {dimension_numbers = #tpu.dot_dimension_numbers<[1], [0], [0], [1], [0, 0, 1, 1], [], []>} : vector<8x32xf32>, vector<32x8xf32>, vector<8x8xf32> -> vector<8x8xf32>
    %cst_41 = arith.constant dense<0.000000e+00> : vector<8x8xf32>
    %57 = tpu.matmul %50, %53, %cst_41 {dimension_numbers = #tpu.dot_dimension_numbers<[1], [1], [0], [0], [0, 0, 1, 0], [], []>} : vector<8x8xf32>, vector<8x8xf32>, vector<8x8xf32> -> vector<8x8xf32>
    %cst_42 = arith.constant dense<0xFF800000> : vector<8xf32>
    %58 = vector.multi_reduction <maximumf>, %57, %cst_42 [1] : vector<8x8xf32> to vector<8xf32>
    %59 = vector.shape_cast %58 : vector<8xf32> to vector<8x1xf32>
    %60 = vector.broadcast %59 : vector<8x1xf32> to vector<8x8xf32>
    %61 = arith.subf %57, %60 : vector<8x8xf32>
    %62 = math.exp %61 : vector<8x8xf32>
    %cst_43 = arith.constant dense<0.000000e+00> : vector<8xf32>
    %63 = vector.multi_reduction <add>, %62, %cst_43 [1] : vector<8x8xf32> to vector<8xf32>
    %64 = vector.shape_cast %63 : vector<8xf32> to vector<8x1xf32>
    %65 = vector.broadcast %64 : vector<8x1xf32> to vector<8x8xf32>
    %66 = arith.divf %62, %65 : vector<8x8xf32>
    %cst_44 = arith.constant dense<0.000000e+00> : vector<8x8xf32>
    %67 = tpu.matmul %66, %56, %cst_44 {dimension_numbers = #tpu.dot_dimension_numbers<[1], [0], [0], [1], [0, 0, 1, 1], [], []>} : vector<8x8xf32>, vector<8x8xf32>, vector<8x8xf32> -> vector<8x8xf32>
    %c1_45 = arith.constant 1 : index
    %c0_46 = arith.constant 0 : index
    %c0_47 = arith.constant 0 : index
    %68 = vector.load %arg6[%c1_45, %c0_46, %c0_47] : memref<4x8x32xf32, #tpu.memory_space<vmem>>, vector<1x8x32xf32>
    %69 = vector.shape_cast %68 : vector<1x8x32xf32> to vector<8x32xf32>
    %cst_48 = arith.constant dense<0.000000e+00> : vector<8x32xf32>
    %70 = tpu.matmul %67, %69, %cst_48 {dimension_numbers = #tpu.dot_dimension_numbers<[1], [0], [0], [1], [0, 0, 1, 1], [], []>} : vector<8x8xf32>, vector<8x32xf32>, vector<8x32xf32> -> vector<8x32xf32>
    %71 = arith.addf %47, %70 : vector<8x32xf32>
    %c2 = arith.constant 2 : index
    %c0_49 = arith.constant 0 : index
    %c0_50 = arith.constant 0 : index
    %72 = vector.load %arg3[%c2, %c0_49, %c0_50] : memref<4x32x8xf32, #tpu.memory_space<vmem>>, vector<1x32x8xf32>
    %73 = vector.shape_cast %72 : vector<1x32x8xf32> to vector<32x8xf32>
    %cst_51 = arith.constant dense<0.000000e+00> : vector<8x8xf32>
    %74 = tpu.matmul %22, %73, %cst_51 {dimension_numbers = #tpu.dot_dimension_numbers<[1], [0], [0], [1], [0, 0, 1, 1], [], []>} : vector<8x32xf32>, vector<32x8xf32>, vector<8x8xf32> -> vector<8x8xf32>
    %c2_52 = arith.constant 2 : index
    %c0_53 = arith.constant 0 : index
    %c0_54 = arith.constant 0 : index
    %75 = vector.load %arg4[%c2_52, %c0_53, %c0_54] : memref<4x32x8xf32, #tpu.memory_space<vmem>>, vector<1x32x8xf32>
    %76 = vector.shape_cast %75 : vector<1x32x8xf32> to vector<32x8xf32>
    %cst_55 = arith.constant dense<0.000000e+00> : vector<8x8xf32>
    %77 = tpu.matmul %22, %76, %cst_55 {dimension_numbers = #tpu.dot_dimension_numbers<[1], [0], [0], [1], [0, 0, 1, 1], [], []>} : vector<8x32xf32>, vector<32x8xf32>, vector<8x8xf32> -> vector<8x8xf32>
    %c2_56 = arith.constant 2 : index
    %c0_57 = arith.constant 0 : index
    %c0_58 = arith.constant 0 : index
    %78 = vector.load %arg5[%c2_56, %c0_57, %c0_58] : memref<4x32x8xf32, #tpu.memory_space<vmem>>, vector<1x32x8xf32>
    %79 = vector.shape_cast %78 : vector<1x32x8xf32> to vector<32x8xf32>
    %cst_59 = arith.constant dense<0.000000e+00> : vector<8x8xf32>
    %80 = tpu.matmul %22, %79, %cst_59 {dimension_numbers = #tpu.dot_dimension_numbers<[1], [0], [0], [1], [0, 0, 1, 1], [], []>} : vector<8x32xf32>, vector<32x8xf32>, vector<8x8xf32> -> vector<8x8xf32>
    %cst_60 = arith.constant dense<0.000000e+00> : vector<8x8xf32>
    %81 = tpu.matmul %74, %77, %cst_60 {dimension_numbers = #tpu.dot_dimension_numbers<[1], [1], [0], [0], [0, 0, 1, 0], [], []>} : vector<8x8xf32>, vector<8x8xf32>, vector<8x8xf32> -> vector<8x8xf32>
    %cst_61 = arith.constant dense<0xFF800000> : vector<8xf32>
    %82 = vector.multi_reduction <maximumf>, %81, %cst_61 [1] : vector<8x8xf32> to vector<8xf32>
    %83 = vector.shape_cast %82 : vector<8xf32> to vector<8x1xf32>
    %84 = vector.broadcast %83 : vector<8x1xf32> to vector<8x8xf32>
    %85 = arith.subf %81, %84 : vector<8x8xf32>
    %86 = math.exp %85 : vector<8x8xf32>
    %cst_62 = arith.constant dense<0.000000e+00> : vector<8xf32>
    %87 = vector.multi_reduction <add>, %86, %cst_62 [1] : vector<8x8xf32> to vector<8xf32>
    %88 = vector.shape_cast %87 : vector<8xf32> to vector<8x1xf32>
    %89 = vector.broadcast %88 : vector<8x1xf32> to vector<8x8xf32>
    %90 = arith.divf %86, %89 : vector<8x8xf32>
    %cst_63 = arith.constant dense<0.000000e+00> : vector<8x8xf32>
    %91 = tpu.matmul %90, %80, %cst_63 {dimension_numbers = #tpu.dot_dimension_numbers<[1], [0], [0], [1], [0, 0, 1, 1], [], []>} : vector<8x8xf32>, vector<8x8xf32>, vector<8x8xf32> -> vector<8x8xf32>
    %c2_64 = arith.constant 2 : index
    %c0_65 = arith.constant 0 : index
    %c0_66 = arith.constant 0 : index
    %92 = vector.load %arg6[%c2_64, %c0_65, %c0_66] : memref<4x8x32xf32, #tpu.memory_space<vmem>>, vector<1x8x32xf32>
    %93 = vector.shape_cast %92 : vector<1x8x32xf32> to vector<8x32xf32>
    %cst_67 = arith.constant dense<0.000000e+00> : vector<8x32xf32>
    %94 = tpu.matmul %91, %93, %cst_67 {dimension_numbers = #tpu.dot_dimension_numbers<[1], [0], [0], [1], [0, 0, 1, 1], [], []>} : vector<8x8xf32>, vector<8x32xf32>, vector<8x32xf32> -> vector<8x32xf32>
    %95 = arith.addf %71, %94 : vector<8x32xf32>
    %c3 = arith.constant 3 : index
    %c0_68 = arith.constant 0 : index
    %c0_69 = arith.constant 0 : index
    %96 = vector.load %arg3[%c3, %c0_68, %c0_69] : memref<4x32x8xf32, #tpu.memory_space<vmem>>, vector<1x32x8xf32>
    %97 = vector.shape_cast %96 : vector<1x32x8xf32> to vector<32x8xf32>
    %cst_70 = arith.constant dense<0.000000e+00> : vector<8x8xf32>
    %98 = tpu.matmul %22, %97, %cst_70 {dimension_numbers = #tpu.dot_dimension_numbers<[1], [0], [0], [1], [0, 0, 1, 1], [], []>} : vector<8x32xf32>, vector<32x8xf32>, vector<8x8xf32> -> vector<8x8xf32>
    %c3_71 = arith.constant 3 : index
    %c0_72 = arith.constant 0 : index
    %c0_73 = arith.constant 0 : index
    %99 = vector.load %arg4[%c3_71, %c0_72, %c0_73] : memref<4x32x8xf32, #tpu.memory_space<vmem>>, vector<1x32x8xf32>
    %100 = vector.shape_cast %99 : vector<1x32x8xf32> to vector<32x8xf32>
    %cst_74 = arith.constant dense<0.000000e+00> : vector<8x8xf32>
    %101 = tpu.matmul %22, %100, %cst_74 {dimension_numbers = #tpu.dot_dimension_numbers<[1], [0], [0], [1], [0, 0, 1, 1], [], []>} : vector<8x32xf32>, vector<32x8xf32>, vector<8x8xf32> -> vector<8x8xf32>
    %c3_75 = arith.constant 3 : index
    %c0_76 = arith.constant 0 : index
    %c0_77 = arith.constant 0 : index
    %102 = vector.load %arg5[%c3_75, %c0_76, %c0_77] : memref<4x32x8xf32, #tpu.memory_space<vmem>>, vector<1x32x8xf32>
    %103 = vector.shape_cast %102 : vector<1x32x8xf32> to vector<32x8xf32>
    %cst_78 = arith.constant dense<0.000000e+00> : vector<8x8xf32>
    %104 = tpu.matmul %22, %103, %cst_78 {dimension_numbers = #tpu.dot_dimension_numbers<[1], [0], [0], [1], [0, 0, 1, 1], [], []>} : vector<8x32xf32>, vector<32x8xf32>, vector<8x8xf32> -> vector<8x8xf32>
    %cst_79 = arith.constant dense<0.000000e+00> : vector<8x8xf32>
    %105 = tpu.matmul %98, %101, %cst_79 {dimension_numbers = #tpu.dot_dimension_numbers<[1], [1], [0], [0], [0, 0, 1, 0], [], []>} : vector<8x8xf32>, vector<8x8xf32>, vector<8x8xf32> -> vector<8x8xf32>
    %cst_80 = arith.constant dense<0xFF800000> : vector<8xf32>
    %106 = vector.multi_reduction <maximumf>, %105, %cst_80 [1] : vector<8x8xf32> to vector<8xf32>
    %107 = vector.shape_cast %106 : vector<8xf32> to vector<8x1xf32>
    %108 = vector.broadcast %107 : vector<8x1xf32> to vector<8x8xf32>
    %109 = arith.subf %105, %108 : vector<8x8xf32>
    %110 = math.exp %109 : vector<8x8xf32>
    %cst_81 = arith.constant dense<0.000000e+00> : vector<8xf32>
    %111 = vector.multi_reduction <add>, %110, %cst_81 [1] : vector<8x8xf32> to vector<8xf32>
    %112 = vector.shape_cast %111 : vector<8xf32> to vector<8x1xf32>
    %113 = vector.broadcast %112 : vector<8x1xf32> to vector<8x8xf32>
    %114 = arith.divf %110, %113 : vector<8x8xf32>
    %cst_82 = arith.constant dense<0.000000e+00> : vector<8x8xf32>
    %115 = tpu.matmul %114, %104, %cst_82 {dimension_numbers = #tpu.dot_dimension_numbers<[1], [0], [0], [1], [0, 0, 1, 1], [], []>} : vector<8x8xf32>, vector<8x8xf32>, vector<8x8xf32> -> vector<8x8xf32>
    %c3_83 = arith.constant 3 : index
    %c0_84 = arith.constant 0 : index
    %c0_85 = arith.constant 0 : index
    %116 = vector.load %arg6[%c3_83, %c0_84, %c0_85] : memref<4x8x32xf32, #tpu.memory_space<vmem>>, vector<1x8x32xf32>
    %117 = vector.shape_cast %116 : vector<1x8x32xf32> to vector<8x32xf32>
    %cst_86 = arith.constant dense<0.000000e+00> : vector<8x32xf32>
    %118 = tpu.matmul %115, %117, %cst_86 {dimension_numbers = #tpu.dot_dimension_numbers<[1], [0], [0], [1], [0, 0, 1, 1], [], []>} : vector<8x8xf32>, vector<8x32xf32>, vector<8x32xf32> -> vector<8x32xf32>
    %119 = arith.addf %95, %118 : vector<8x32xf32>
    %c0_87 = arith.constant 0 : index
    %c0_88 = arith.constant 0 : index
    %120 = vector.load %arg7[%c0_87, %c0_88] : memref<1x32xf32, #tpu.memory_space<vmem>>, vector<1x32xf32>
    %121 = vector.broadcast %120 : vector<1x32xf32> to vector<8x32xf32>
    %122 = arith.addf %119, %121 : vector<8x32xf32>
    %c0_89 = arith.constant 0 : index
    %c0_90 = arith.constant 0 : index
    %123 = vector.load %arg0[%c0_89, %c0_90] : memref<16x32xf32, #tpu.memory_space<vmem>>, vector<16x32xf32>
    %124 = tpu.concatenate %122, %122 in 0 : vector<8x32xf32>, vector<8x32xf32> -> vector<16x32xf32>
    %125 = arith.addf %124, %123 : vector<16x32xf32>
    %cst_91 = arith.constant dense<0.000000e+00> : vector<16xf32>
    %126 = vector.multi_reduction <add>, %125, %cst_91 [1] : vector<16x32xf32> to vector<16xf32>
    %127 = vector.shape_cast %126 : vector<16xf32> to vector<16x1xf32>
    %cst_92 = arith.constant 3.200000e+01 : f32
    %128 = vector.broadcast %cst_92 : f32 to vector<16x1xf32>
    %129 = arith.divf %127, %128 : vector<16x1xf32>
    %130 = vector.broadcast %129 : vector<16x1xf32> to vector<16x32xf32>
    %131 = arith.subf %125, %130 : vector<16x32xf32>
    %132 = arith.mulf %131, %131 : vector<16x32xf32>
    %cst_93 = arith.constant dense<0.000000e+00> : vector<16xf32>
    %133 = vector.multi_reduction <add>, %132, %cst_93 [1] : vector<16x32xf32> to vector<16xf32>
    %134 = vector.shape_cast %133 : vector<16xf32> to vector<16x1xf32>
    %cst_94 = arith.constant 3.200000e+01 : f32
    %135 = vector.broadcast %cst_94 : f32 to vector<16x1xf32>
    %136 = arith.divf %134, %135 : vector<16x1xf32>
    %cst_95 = arith.constant 9.99999974E-6 : f32
    %137 = vector.broadcast %cst_95 : f32 to vector<16x1xf32>
    %138 = arith.addf %136, %137 : vector<16x1xf32>
    %139 = math.rsqrt %138 : vector<16x1xf32>
    %140 = vector.broadcast %139 : vector<16x1xf32> to vector<16x32xf32>
    %141 = arith.mulf %131, %140 : vector<16x32xf32>
    %142 = vector.broadcast %0 : vector<1x32xf32> to vector<16x32xf32>
    %143 = arith.mulf %141, %142 : vector<16x32xf32>
    %144 = vector.broadcast %1 : vector<1x32xf32> to vector<16x32xf32>
    %145 = arith.addf %143, %144 : vector<16x32xf32>
    %c0_96 = arith.constant 0 : index
    %c0_97 = arith.constant 0 : index
    %146 = vector.load %arg8[%c0_96, %c0_97] : memref<32x128xf32, #tpu.memory_space<vmem>>, vector<32x128xf32>
    %cst_98 = arith.constant dense<0.000000e+00> : vector<16x128xf32>
    %147 = tpu.matmul %145, %146, %cst_98 {dimension_numbers = #tpu.dot_dimension_numbers<[1], [0], [0], [1], [0, 0, 1, 1], [], []>} : vector<16x32xf32>, vector<32x128xf32>, vector<16x128xf32> -> vector<16x128xf32>
    %c0_99 = arith.constant 0 : index
    %c0_100 = arith.constant 0 : index
    %148 = vector.load %arg9[%c0_99, %c0_100] : memref<1x128xf32, #tpu.memory_space<vmem>>, vector<1x128xf32>
    %149 = vector.broadcast %148 : vector<1x128xf32> to vector<16x128xf32>
    %150 = arith.addf %147, %149 : vector<16x128xf32>
    %cst_101 = arith.constant 5.000000e-01 : f32
    %151 = vector.broadcast %cst_101 : f32 to vector<16x128xf32>
    %152 = arith.mulf %151, %150 : vector<16x128xf32>
    %153 = arith.mulf %150, %150 : vector<16x128xf32>
    %154 = arith.mulf %153, %150 : vector<16x128xf32>
    %cst_102 = arith.constant 4.471500e-02 : f32
    %155 = vector.broadcast %cst_102 : f32 to vector<16x128xf32>
    %156 = arith.mulf %155, %154 : vector<16x128xf32>
    %157 = arith.addf %150, %156 : vector<16x128xf32>
    %cst_103 = arith.constant 0.797884583 : f32
    %158 = vector.broadcast %cst_103 : f32 to vector<16x128xf32>
    %159 = arith.mulf %158, %157 : vector<16x128xf32>
    %160 = math.tanh %159 : vector<16x128xf32>
    %cst_104 = arith.constant 1.000000e+00 : f32
    %161 = vector.broadcast %cst_104 : f32 to vector<16x128xf32>
    %162 = arith.addf %161, %160 : vector<16x128xf32>
    %163 = arith.mulf %152, %162 : vector<16x128xf32>
    %c0_105 = arith.constant 0 : index
    %c0_106 = arith.constant 0 : index
    %164 = vector.load %arg10[%c0_105, %c0_106] : memref<128x32xf32, #tpu.memory_space<vmem>>, vector<128x32xf32>
    %cst_107 = arith.constant dense<0.000000e+00> : vector<16x32xf32>
    %165 = tpu.matmul %163, %164, %cst_107 {dimension_numbers = #tpu.dot_dimension_numbers<[1], [0], [0], [1], [0, 0, 1, 1], [], []>} : vector<16x128xf32>, vector<128x32xf32>, vector<16x32xf32> -> vector<16x32xf32>
    %c0_108 = arith.constant 0 : index
    %c0_109 = arith.constant 0 : index
    %166 = vector.load %arg11[%c0_108, %c0_109] : memref<1x32xf32, #tpu.memory_space<vmem>>, vector<1x32xf32>
    %167 = vector.broadcast %166 : vector<1x32xf32> to vector<16x32xf32>
    %168 = arith.addf %165, %167 : vector<16x32xf32>
    %169 = arith.addf %168, %125 : vector<16x32xf32>
    %c0_110 = arith.constant 0 : index
    %c0_111 = arith.constant 0 : index
    %170 = vector.load %arg12[%c0_110, %c0_111] : memref<16x32xf32, #tpu.memory_space<vmem>>, vector<16x32xf32>
    tpu.vector_store %arg12[%c0_110, %c0_111], %169 {strides = array<i32>} : memref<16x32xf32, #tpu.memory_space<vmem>>, vector<16x32xf32>,
    return
  }
}

</mosaic_0001>

<bundles_post_ra>
// kernel: encoder_block.1
= control target key start
LH: loop header
LB: loop body
LE: loop exit
PB: predicated region body
PF: predicated region fallthrough
CT: control target
= control target key end

     0   :  { %vm45_vm0 = vcmask 261120   ;;  %s1491_s0 = inlined_call_operand.vmem [shape: f32[16,32], index: 0, kind: input, shape index: {}]   ;;  %s1492_s1 = inlined_call_operand.vmem [shape: f32[1,32], index: 1, kind: input, shape index: {}]   ;;  %s1493_s2 = inlined_call_operand.vmem [shape: f32[1,32], index: 2, kind: input, shape index: {}]   ;;  %s1494_s3 = inlined_call_operand.vmem [shape: f32[4,32,8], index: 3, kind: input, shape index: {}]   ;;  %s1495_s4 = inlined_call_operand.vmem [shape: f32[4,32,8], index: 4, kind: input, shape index: {}]   ;;  %s1496_s5 = inlined_call_operand.vmem [shape: f32[4,32,8], index: 5, kind: input, shape index: {}]   ;;  %s1497_s6 = inlined_call_operand.vmem [shape: f32[4,8,32], index: 6, kind: input, shape index: {}]   ;;  %s1498_s7 = inlined_call_operand.vmem [shape: f32[1,32], index: 7, kind: input, shape index: {}]   ;;  %s1499_s8 = inlined_call_operand.vmem [shape: f32[32,128], index: 8, kind: input, shape index: {}]   ;;  %s1500_s9 = inlined_call_operand.vmem [shape: f32[1,128], index: 9, kind: input, shape index: {}]   ;;  %s1501_s10 = inlined_call_operand.vmem [shape: f32[128,32], index: 10, kind: input, shape index: {}]   ;;  %s1502_s11 = inlined_call_operand.vmem [shape: f32[1,32], index: 11, kind: input, shape index: {}]   ;;  %s1503_s12 = inlined_call_operand.hbm [shape: f32[16,32], index: 12, kind: output, shape index: {}]  }
   0x1   :  { %v1158_v0 = vld [vmem:[%s1491_s0] sm:$0xff] }
   0x2   :  { %v46_v1 = vsel %vm45_vm0, %v1158_v0, 0.0 }
   0x3   :  { %47 = vadd.xlane.f32.xlu0 %v46_v1 }
   0x4   :  { %17 = vsyncpa [#allocation3], 0  ;;  %v1086_v2 = vmov 32.0   ;;  %v86_v14 = vld [vmem:[%s1494_s3 + $0x18] sm:$0xff]  ;;  %v85_v17 = vld [vmem:[%s1494_s3 + $0x10] sm:$0xff]  ;;  %vm158_vm5 = vcmask 64512  }
   0x5   :  { %1032 = vrcp.f32 %v1086_v2  ;;  %v137_v15 = vld [vmem:[%s1496_s5 + $0x18] sm:$0xff]  ;;  %102 = vmatpush.msra.mxu1 %v86_v14  ;;  %v136_v18 = vld [vmem:[%s1496_s5 + $0x10] sm:$0xff]  ;;  %v84_v20 = vld [vmem:[%s1494_s3 + $0x8] sm:$0xff]  ;;  %s1087_s25 = smov [#allocation2]   ;;  %s942_s28 = sshll.u32 %s1503_s12, 4  ;;  %s943_s28 = int_to_ptr.hbm [resolvable:$true] %s942_s28 }
   0x6   :  { %v989_v16 = vld [vmem:[%s1495_s4 + $0x58] sm:$0xff]  ;;  %150 = vmatpush.msra.mxu2 %v137_v15  ;;  %v988_v19 = vld [vmem:[%s1495_s4 + $0x50] sm:$0xff]  ;;  %v135_v21 = vld [vmem:[%s1496_s5 + $0x8] sm:$0xff]  ;;  %s940_s26 = sshll.u32 %s1087_s25, 4  ;;  %s1089_s29 = smov 8   ;;  %s941_s26 = int_to_ptr.vmem [resolvable:$true] %s940_s26 }
   0x7   :  { %471 = vmatpush.msra.mxu0 %v989_v16  ;;  %103 = vmatpush.msra.mxu1 %v85_v17  ;;  %v987_v22 = vld [vmem:[%s1495_s4 + $0x48] sm:$0xff]  ;;  %v83_v23 = vld [vmem:[%s1494_s3] sm:$0xff]  ;;  %v113_v26 = vld [vmem:[%s1495_s4 + $0x18] sm:$0xff] }
   0x8   :  { %151 = vmatpush.msra.mxu2 %v136_v18  ;;  %v134_v24 = vld [vmem:[%s1496_s5] sm:$0xff]  ;;  %v963_v27 = vld [vmem:[%s1494_s3 + $0x38] sm:$0xff]  ;;  %v112_v28 = vld [vmem:[%s1495_s4 + $0x10] sm:$0xff] }
   0x9   :  { %472 = vmatpush.msra.mxu0 %v988_v19  ;;  %104 = vmatpush.msra.mxu1 %v84_v20  ;;  %v986_v25 = vld [vmem:[%s1495_s4 + $0x40] sm:$0xff]  ;;  %v962_v29 = vld [vmem:[%s1494_s3 + $0x30] sm:$0xff]  ;;  %v111_v31 = vld [vmem:[%s1495_s4 + $0x8] sm:$0xff] }
   0xa   :  { %152 = vmatpush.msra.mxu2 %v135_v21  ;;  %v961_v32 = vld [vmem:[%s1494_s3 + $0x28] sm:$0xff]  ;;  %v110_v34 = vld [vmem:[%s1495_s4] sm:$0xff]  ;;  %v968_v49 = vld [vmem:[%s1495_s4 + $0x38] sm:$0xff] }
   0xb   :  { %v1033_v3 = vpop.eup %1032  ;;  %473 = vmatpush.msra.mxu0 %v987_v22  ;;  %105 = vmatpush.msra.mxu1 %v83_v23  ;;  %v960_v35 = vld [vmem:[%s1494_s3 + $0x20] sm:$0xff]  ;;  %v973_v50 = vld [vmem:[%s1496_s5 + $0x38] sm:$0xff]  ;;  %v967_v51 = vld [vmem:[%s1495_s4 + $0x30] sm:$0xff] }
   0xc   :  { %v50_v4 = vmul.f32 32.0, %v1033_v3  ;;  %vm54_vm1 = vweird.f32 %v1033_v3  ;;  %153 = vmatpush.msra.mxu2 %v134_v24  ;;  %v1231_v43 = vld [vmem:[%s1492_s1] ss:$0 sm:$0xff]  ;;  %v972_v52 = vld [vmem:[%s1496_s5 + $0x30] sm:$0xff]  ;;  %v966_v53 = vld [vmem:[%s1495_s4 + $0x28] sm:$0xff] }
   0xd   :  { %474 = vmatpush.msra.mxu0 %v986_v25  ;;  %126 = vmatpush.msrb.mxu1 %v113_v26  ;;  %v1236_v46 = vld [vmem:[%s1493_s2] ss:$0 sm:$0xff]  ;;  %v971_v54 = vld [vmem:[%s1496_s5 + $0x28] sm:$0xff]  ;;  %v984_v22 = vld [vmem:[%s1494_s3 + $0x58] sm:$0xff] }
   0xe   :  { %v51_v5 = vsub.f32 1.0, %v50_v4  ;;  %250 = vmatpush.msrb.mxu2 %v963_v27  ;;  %v965_v55 = vld [vmem:[%s1495_s4 + $0x20] sm:$0xff]  ;;  %v983_v23 = vld [vmem:[%s1494_s3 + $0x50] sm:$0xff]  ;;  %v982_v24 = vld [vmem:[%s1494_s3 + $0x48] sm:$0xff] }
   0xf   :  { %127 = vmatpush.msrb.mxu1 %v112_v28  ;;  %v970_v56 = vld [vmem:[%s1496_s5 + $0x20] sm:$0xff]  ;;  %v1009_v26 = vld [vmem:[%s1495_s4 + $0x78] sm:$0xff]  ;;  %v1008_v28 = vld [vmem:[%s1495_s4 + $0x70] sm:$0xff] }
  0x10   :  { %v52_v6 = vmul.f32 %v1033_v3, %v51_v5  ;;  %251 = vmatpush.msrb.mxu2 %v962_v29  ;;  %v232_v57 = vld [vmem:[%s1497_s6] sm:$0xff]  ;;  %v1007_v29 = vld [vmem:[%s1495_s4 + $0x68] sm:$0xff] }
  0x11   :  { %128 = vmatpush.msrb.mxu1 %v111_v31  ;;  %v981_v25 = vld [vmem:[%s1494_s3 + $0x40] sm:$0xff] }
  0x12   :  { %v53_v7 = vadd.f32 %v1033_v3, %v52_v6  ;;  %252 = vmatpush.msrb.mxu2 %v961_v32 }
  0x13   :  { %129 = vmatpush.msrb.mxu1 %v110_v34  ;;  %v999_v34 = vld [vmem:[%s1497_s6 + $0x10] sm:$0xff] }
  0x14   :  { %v1162_v8 = vsel %vm54_vm1, %v1033_v3, %v53_v7  ;;  %253 = vmatpush.msrb.mxu2 %v960_v35  ;;  %597 = vmatpush.msrb.mxu0 %v999_v34 }
  0x76   :  { %v48_v9 = vpop.xlane.xlu0 %47 }
  0x77   :  { %v56_v10 = vmul.f32 %v1162_v8, %v48_v9 }
  0x79   :  { %v57_v11 = vsub.f32 %v1158_v0, %v56_v10 }
  0x7b   :  { %v58_v12 = vmul.f32 %v57_v11, %v57_v11 }
  0x7d   :  { %v59_v13 = vsel %vm45_vm0, %v58_v12, 0.0 }
  0x7e   :  { %60 = vadd.xlane.f32.xlu0 %v59_v13 }
  0xf1   :  { %v61_v30 = vpop.xlane.xlu0 %60 }
  0xf2   :  { %v62_v33 = vmul.f32 %v61_v30, %v1162_v8  ;;  %v1006_v30 = vld [vmem:[%s1495_s4 + $0x60] sm:$0xff] }
  0xf4   :  { %v63_v36 = vadd.f32 1e-05, %v62_v33 }
  0xf6   :  { %1034 = vrsqrt.f32 %v63_v36  ;;  %vm70_vm3 = vweird.f32 %v63_v36 }
  0xfc   :  { %v1035_v37 = vpop.eup %1034 }
  0xfd   :  { %v65_v38 = vmul.f32 %v1035_v37, %v63_v36  ;;  %vm71_vm2 = vweird.f32 %v1035_v37 }
  0xfe   :  { %vm72_vm4 = vmor %vm70_vm3, %vm71_vm2 }
  0xff   :  { %v66_v39 = vmul.f32 %v1035_v37, %v65_v38 }
 0x101   :  { %v67_v40 = vmul.f32 0.5, %v66_v39 }
 0x103   :  { %v68_v41 = vsub.f32 1.5, %v67_v40 }
 0x105   :  { %v69_v42 = vmul.f32 %v1035_v37, %v68_v41 }
 0x107   :  { %v73_v44 = vsel %vm72_vm4, %v1035_v37, %v69_v42 }
 0x108   :  { %v74_v45 = vmul.f32 %v73_v44, %v57_v11 }
 0x10a   :  { %v78_v47 = vmul.f32 %v1231_v43, %v74_v45 }
 0x10c   :  { %v1240_v48 = vadd.f32 %v1236_v46, %v78_v47 }
 0x10e   :  { %954 = vmatmul.msk.f32.vlgmr.msra.gmra.mxu1 %vm45_vm0, %v1240_v48  ;;  %956 = vmatmul.msk.f32.vlgmr.msra.gmra.mxu2 %vm45_vm0, %v1240_v48 }
 0x10f   :  { %990 = vmatmul.msk.f32.vlgmr.msra.gmra.mxu0 %vm45_vm0, %v1240_v48  ;;  %275 = vmatpush.msra.mxu1 %v968_v49 }
 0x110   :  { %300 = vmatpush.msra.mxu2 %v973_v50 }
 0x111   :  { %276 = vmatpush.msra.mxu1 %v967_v51 }
 0x112   :  { %301 = vmatpush.msra.mxu2 %v972_v52 }
 0x113   :  { %277 = vmatpush.msra.mxu1 %v966_v53 }
 0x114   :  { %302 = vmatpush.msra.mxu2 %v971_v54 }
 0x115   :  { %278 = vmatpush.msra.mxu1 %v965_v55 }
 0x116   :  { %955 = vmatmul.msk.f32.vlgmr.msrb.gmra.mxu1 %vm45_vm0, %v1240_v48  ;;  %964 = vmatmul.msk.f32.vlgmr.msrb.gmra.mxu2 %vm45_vm0, %v1240_v48 }
 0x117   :  { %303 = vmatpush.msra.mxu2 %v970_v56 }
 0x119   :  { %424 = vmatpush.msrb.mxu2 %v232_v57 }
 0x11e   :  { %969 = vmatmul.msk.f32.vlgmr.msra.gmra.mxu1 %vm45_vm0, %v1240_v48  ;;  %974 = vmatmul.msk.f32.vlgmr.msra.gmra.mxu2 %vm45_vm0, %v1240_v48 }
 0x18b   :  { %v107_v58 = vpop.f32.mrf.mxu1 }
 0x18c   :  { %v476_v59 = vpop.f32.mrf.mxu0 }
 0x18d   :  { %996 = vmatpush.xpose.msk.msra.mxu2 %vm158_vm5, %v476_v59 }
 0x191   :  { %v155_v60 = vpop.f32.mrf.mxu2 }
 0x193   :  { %v131_v61 = vpop.f32.mrf.mxu1 }
 0x194   :  { %957 = vmatpush.xpose.msk.msra.mxu3 %vm158_vm5, %v131_v61 }
 0x197   :  { %958 = vmatmul.msk.f32.vlgmr.msra.gmra.mxu3 %vm158_vm5, %v107_v58 }
 0x198   :  { %227 = vmatpush.msrb.mxu3 %v155_v60 }
 0x199   :  { %v255_v62 = vpop.f32.mrf.mxu2 }
 0x19b   :  { %v280_v63 = vpop.f32.mrf.mxu1 }
 0x19c   :  { %975 = vmatpush.xpose.msk.msra.mxu3 %vm158_vm5, %v280_v63 }
 0x1a1   :  { %v305_v1 = vpop.f32.mrf.mxu2 }
 0x1a2   :  { %376 = vmatpush.msrb.mxu1 %v305_v1  ;;  %v978_v1 = vld [vmem:[%s1497_s6 + $0x8] sm:$0xff] }
 0x1a4   :  { %401 = vmatpush.msra.mxu1 %v978_v1 }
 0x21a   :  { %v182_v2 = vpop.f32.mrf.mxu3 }
 0x21b   :  { %v185_v3 = vsel %vm158_vm5, %v182_v2, -inf }
 0x21c   :  { %186 = vmax.xlane.f32.xlu1 %v185_v3  ;;  %v993_v3 = vld [vmem:[%s1496_s5 + $0x50] sm:$0xff] }
 0x28f   :  { %v187_v4 = vpop.xlane.xlu1 %186 }
 0x290   :  { %v188_v5 = vsub.f32 %v182_v2, %v187_v4  ;;  %v994_v2 = vld [vmem:[%s1496_s5 + $0x58] sm:$0xff]  ;;  %v992_v4 = vld [vmem:[%s1496_s5 + $0x48] sm:$0xff] }
 0x292   :  { %v189_v6 = vmul.f32 1.442695, %v188_v5  ;;  %v991_v5 = vld [vmem:[%s1496_s5 + $0x40] sm:$0xff] }
 0x294   :  { %1036 = vpow2.f32 %v189_v6  ;;  %v1004_v6 = vld [vmem:[%s1494_s3 + $0x78] sm:$0xff] }
 0x29a   :  { %v1037_v7 = vpop.eup %1036 }
 0x29b   :  { %v191_v9 = vsel %vm158_vm5, %v1037_v7, 0.0 }
 0x29c   :  { %192 = vadd.xlane.f32.xlu1 %v191_v9  ;;  %v1003_v9 = vld [vmem:[%s1494_s3 + $0x70] sm:$0xff] }
 0x30f   :  { %v193_v10 = vpop.xlane.xlu1 %192 }
 0x310   :  { %1038 = vrcp.f32 %v193_v10  ;;  %v205_v14 = vand.u32 2147483648, %v193_v10  ;;  %v203_v16 = vand.u32 2147483647, %v193_v10  ;;  %vm199_vm7 = vweird.f32 %v193_v10 }
 0x312   :  { %v206_v18 = vor.u32 1.1754944e-38, %v205_v14  ;;  %vm204_vm9 = vcmp.eq.f32.partialorder %v203_v16, 8.507059e+37 }
 0x316   :  { %v1039_v11 = vpop.eup %1038 }
 0x317   :  { %v195_v12 = vmul.f32 %v1039_v11, %v193_v10  ;;  %vm200_vm6 = vweird.f32 %v1039_v11  ;;  %v1002_v10 = vld [vmem:[%s1494_s3 + $0x68] sm:$0xff] }
 0x318   :  { %vm201_vm8 = vmor %vm199_vm7, %vm200_vm6 }
 0x319   :  { %v196_v13 = vsub.f32 1.0, %v195_v12 }
 0x31b   :  { %v197_v15 = vmul.f32 %v1039_v11, %v196_v13 }
 0x31d   :  { %v198_v17 = vadd.f32 %v1039_v11, %v197_v15 }
 0x31f   :  { %v202_v19 = vsel %vm201_vm8, %v1039_v11, %v198_v17  ;;  %v1001_v11 = vld [vmem:[%s1494_s3 + $0x60] sm:$0xff] }
 0x320   :  { %v207_v20 = vsel %vm204_vm9, %v206_v18, %v202_v19 }
 0x321   :  { %v208_v21 = vmul.f32 %v1037_v7, %v207_v20 }
 0x323   :  { %959 = vmatmul.msk.f32.vlgmr.msrb.gmra.mxu3 %vm158_vm5, %v208_v21 }
 0x324   :  { %446 = vmatpush.msrb.mxu3 %v984_v22 }
 0x326   :  { %447 = vmatpush.msrb.mxu3 %v983_v23 }
 0x328   :  { %448 = vmatpush.msrb.mxu3 %v982_v24 }
 0x32a   :  { %449 = vmatpush.msrb.mxu3 %v981_v25 }
 0x32b   :  { %976 = vmatmul.msk.f32.vlgmr.msra.gmra.mxu3 %vm158_vm5, %v255_v62 }
 0x333   :  { %985 = vmatmul.msk.f32.vlgmr.msrb.gmra.mxu3 %vm45_vm0, %v1240_v48 }
 0x3a6   :  { %v229_v27 = vpop.f32.mrf.mxu3 }
 0x3a7   :  { %980 = vmatmul.msk.f32.vlgmr.msrb.gmra.mxu2 %vm158_vm5, %v229_v27  ;;  %v1013_v27 = vld [vmem:[%s1496_s5 + $0x70] sm:$0xff] }
 0x3a8   :  { %645 = vmatpush.msrb.mxu2 %v1009_v26  ;;  %v1014_v26 = vld [vmem:[%s1496_s5 + $0x78] sm:$0xff] }
 0x3aa   :  { %646 = vmatpush.msrb.mxu2 %v1008_v28  ;;  %v1012_v28 = vld [vmem:[%s1496_s5 + $0x68] sm:$0xff] }
 0x3ac   :  { %647 = vmatpush.msrb.mxu2 %v1007_v29  ;;  %v1011_v29 = vld [vmem:[%s1496_s5 + $0x60] sm:$0xff] }
 0x3ae   :  { %v331_v31 = vpop.f32.mrf.mxu3  ;;  %648 = vmatpush.msrb.mxu2 %v1006_v30 }
 0x3af   :  { %v334_v32 = vsel %vm158_vm5, %v331_v31, -inf }
 0x3b0   :  { %335 = vmax.xlane.f32.xlu2 %v334_v32 }
 0x3b6   :  { %v451_v33 = vpop.f32.mrf.mxu3 }
 0x3b7   :  { %997 = vmatmul.msk.f32.vlgmr.msra.gmra.mxu2 %vm158_vm5, %v451_v33 }
 0x3bf   :  { %1010 = vmatmul.msk.f32.vlgmr.msrb.gmra.mxu2 %vm45_vm0, %v1240_v48 }
 0x423   :  { %v336_v35 = vpop.xlane.xlu2 %335 }
 0x424   :  { %v337_v36 = vsub.f32 %v331_v31, %v336_v35 }
 0x426   :  { %v338_v37 = vmul.f32 1.442695, %v337_v36 }
 0x428   :  { %1040 = vpow2.f32 %v338_v37 }
 0x42a   :  { %v1326_v40 = vpop.f32.mrf.mxu2 }
 0x42e   :  { %v1041_v38 = vpop.eup %1040 }
 0x42f   :  { %v340_v39 = vsel %vm158_vm5, %v1041_v38, 0.0 }
 0x430   :  { %341 = vadd.xlane.f32.xlu2 %v340_v39 }
 0x43a   :  { %v527_v41 = vpop.f32.mrf.mxu2 }
 0x43b   :  { %v530_v42 = vsel %vm158_vm5, %v527_v41, -inf }
 0x43c   :  { %531 = vmax.xlane.f32.xlu0 %v530_v42 }
 0x442   :  { %v650_v44 = vpop.f32.mrf.mxu2 }
 0x443   :  { %1016 = vmatpush.xpose.msk.msra.mxu0 %vm158_vm5, %v650_v44 }
 0x4a3   :  { %v342_v45 = vpop.xlane.xlu2 %341 }
 0x4a4   :  { %1042 = vrcp.f32 %v342_v45  ;;  %v354_v51 = vand.u32 2147483648, %v342_v45  ;;  %v352_v53 = vand.u32 2147483647, %v342_v45  ;;  %vm348_vm11 = vweird.f32 %v342_v45 }
 0x4a6   :  { %v355_v57 = vor.u32 1.1754944e-38, %v354_v51  ;;  %vm353_vm13 = vcmp.eq.f32.partialorder %v352_v53, 8.507059e+37 }
 0x4aa   :  { %v1043_v47 = vpop.eup %1042 }
 0x4ab   :  { %v344_v49 = vmul.f32 %v1043_v47, %v342_v45  ;;  %vm349_vm10 = vweird.f32 %v1043_v47 }
 0x4ac   :  { %vm350_vm12 = vmor %vm348_vm11, %vm349_vm10 }
 0x4ad   :  { %v345_v50 = vsub.f32 1.0, %v344_v49 }
 0x4af   :  { %v346_v52 = vmul.f32 %v1043_v47, %v345_v50  ;;  %v532_v54 = vpop.xlane.xlu0 %531 }
 0x4b0   :  { %v533_v55 = vsub.f32 %v527_v41, %v532_v54 }
 0x4b1   :  { %v347_v56 = vadd.f32 %v1043_v47, %v346_v52 }
 0x4b2   :  { %v534_v58 = vmul.f32 1.442695, %v533_v55 }
 0x4b3   :  { %v351_v59 = vsel %vm350_vm12, %v1043_v47, %v347_v56 }
 0x4b4   :  { %v356_v60 = vsel %vm353_vm13, %v355_v57, %v351_v59  ;;  %1044 = vpow2.f32 %v534_v58  ;;  %v1019_v57 = vld [vmem:[%s1497_s6 + $0x18] sm:$0xff]  ;;  %v1029_v59 = vld [vmem:[%s1498_s7] ss:$0 sm:$0xff] }
 0x4b5   :  { %v357_v61 = vmul.f32 %v1041_v38, %v356_v60  ;;  %771 = vmatpush.msra.mxu2 %v1019_v57  ;;  %v891_v57 = vld [vmem:[%s1501_s10 + $0x10] sm:$0xff] }
 0x4b7   :  { %977 = vmatmul.msk.f32.vlgmr.msrb.gmra.mxu1 %vm158_vm5, %v357_v61 }
 0x4b8   :  { %496 = vmatpush.msrb.mxu1 %v994_v2 }
 0x4ba   :  { %v1045_v62 = vpop.eup %1044  ;;  %497 = vmatpush.msrb.mxu1 %v993_v3 }
 0x4bb   :  { %v536_v63 = vsel %vm158_vm5, %v1045_v62, 0.0 }
 0x4bc   :  { %537 = vadd.xlane.f32.xlu1 %v536_v63  ;;  %498 = vmatpush.msrb.mxu1 %v992_v4 }
 0x4be   :  { %499 = vmatpush.msrb.mxu1 %v991_v5 }
 0x52f   :  { %v538_v12 = vpop.xlane.xlu1 %537 }
 0x530   :  { %1046 = vrcp.f32 %v538_v12  ;;  %v550_v18 = vand.u32 2147483648, %v538_v12  ;;  %vm544_vm15 = vweird.f32 %v538_v12  ;;  %v548_v19 = vand.u32 2147483647, %v538_v12 }
 0x532   :  { %v551_v22 = vor.u32 1.1754944e-38, %v550_v18  ;;  %vm549_vm2 = vcmp.eq.f32.partialorder %v548_v19, 8.507059e+37  ;;  %v834_v18 = vld [vmem:[%s1499_s8] sm:$0xff] }
 0x534   :  { %v378_v7 = vpop.f32.mrf.mxu1 }
 0x535   :  { %979 = vmatmul.msk.f32.vlgmr.msra.gmra.mxu1 %vm158_vm5, %v378_v7 }
 0x536   :  { %620 = vmatpush.msra.mxu1 %v1004_v6  ;;  %v1047_v13 = vpop.eup %1046 }
 0x537   :  { %v540_v14 = vmul.f32 %v1047_v13, %v538_v12  ;;  %vm545_vm14 = vweird.f32 %v1047_v13 }
 0x538   :  { %621 = vmatpush.msra.mxu1 %v1003_v9  ;;  %vm546_vm1 = vmor %vm544_vm15, %vm545_vm14 }
 0x539   :  { %v541_v15 = vsub.f32 1.0, %v540_v14 }
 0x53a   :  { %622 = vmatpush.msra.mxu1 %v1002_v10 }
 0x53b   :  { %v542_v16 = vmul.f32 %v1047_v13, %v541_v15  ;;  %v837_v15 = vld [vmem:[%s1499_s8 + $0x18] sm:$0xff] }
 0x53c   :  { %623 = vmatpush.msra.mxu1 %v1001_v11 }
 0x53d   :  { %995 = vmatmul.msk.f32.vlgmr.msrb.gmra.mxu1 %vm45_vm0, %v1240_v48  ;;  %v543_v17 = vadd.f32 %v1047_v13, %v542_v16  ;;  %v836_v16 = vld [vmem:[%s1499_s8 + $0x10] sm:$0xff] }
 0x53f   :  { %v547_v21 = vsel %vm546_vm1, %v1047_v13, %v543_v17  ;;  %v835_v17 = vld [vmem:[%s1499_s8 + $0x8] sm:$0xff] }
 0x540   :  { %v552_v23 = vsel %vm549_vm2, %v551_v22, %v547_v21 }
 0x541   :  { %v553_v25 = vmul.f32 %v1045_v62, %v552_v23  ;;  %v783_v62 = vld [vmem:[%s1491_s0 + $0x8] sm:$0xff] }
 0x545   :  { %1005 = vmatmul.msk.f32.vlgmr.msra.gmra.mxu1 %vm45_vm0, %v1240_v48 }
 0x5b2   :  { %v403_v20 = vpop.f32.mrf.mxu1 }
 0x5b3   :  { %v427_v33 = vadd.f32 %v1326_v40, %v403_v20 }
 0x5ba   :  { %v501_v24 = vpop.f32.mrf.mxu1 }
 0x5bb   :  { %572 = vmatpush.msra.mxu3 %v501_v24 }
 0x5bc   :  { %998 = vmatmul.msk.f32.vlgmr.msra.gmra.mxu3 %vm158_vm5, %v553_v25  ;;  %v904_v25 = vld [vmem:[%s1501_s10 + $0x78] sm:$0xff] }
 0x5bd   :  { %670 = vmatpush.msrb.mxu3 %v1014_v26  ;;  %v903_v26 = vld [vmem:[%s1501_s10 + $0x70] sm:$0xff] }
 0x5bf   :  { %671 = vmatpush.msrb.mxu3 %v1013_v27  ;;  %v902_v27 = vld [vmem:[%s1501_s10 + $0x68] sm:$0xff] }
 0x5c1   :  { %672 = vmatpush.msrb.mxu3 %v1012_v28 }
 0x5c2   :  { %v625_v31 = vpop.f32.mrf.mxu1 }
 0x5c3   :  { %673 = vmatpush.msrb.mxu3 %v1011_v29 }
 0x5c4   :  { %1015 = vmatmul.msk.f32.vlgmr.msrb.gmra.mxu3 %vm45_vm0, %v1240_v48 }
 0x5c5   :  { %860 = vmatpush.msra.mxu3 %v837_v15 }
 0x5c7   :  { %861 = vmatpush.msra.mxu3 %v836_v16 }
 0x5c9   :  { %862 = vmatpush.msra.mxu3 %v835_v17 }
 0x5cb   :  { %863 = vmatpush.msra.mxu3 %v834_v18 }
 0x63f   :  { %v574_v30 = vpop.f32.mrf.mxu3 }
 0x640   :  { %1000 = vmatmul.msk.f32.vlgmr.msrb.gmra.mxu0 %vm158_vm5, %v574_v30 }
 0x641   :  { %909 = vmatpush.msrb.mxu0 %v904_v25 }
 0x643   :  { %910 = vmatpush.msrb.mxu0 %v903_v26 }
 0x645   :  { %911 = vmatpush.msrb.mxu0 %v902_v27 }
 0x647   :  { %v675_v32 = vpop.f32.mrf.mxu3 }
 0x648   :  { %1017 = vmatmul.msk.f32.vlgmr.msra.gmra.mxu0 %vm158_vm5, %v625_v31  ;;  %746 = vmatpush.msrb.mxu1 %v675_v32 }
 0x6bd   :  { %v599_v34 = vpop.f32.mrf.mxu0 }
 0x6be   :  { %v602_v35 = vadd.f32 %v599_v34, %v427_v33 }
 0x6c5   :  { %v701_v36 = vpop.f32.mrf.mxu0 }
 0x6c6   :  { %v704_v37 = vsel %vm158_vm5, %v701_v36, -inf }
 0x6c7   :  { %705 = vmax.xlane.f32.xlu2 %v704_v37 }
 0x73a   :  { %v706_v38 = vpop.xlane.xlu2 %705 }
 0x73b   :  { %v707_v39 = vsub.f32 %v701_v36, %v706_v38 }
 0x73d   :  { %v708_v41 = vmul.f32 1.442695, %v707_v39 }
 0x73f   :  { %1048 = vpow2.f32 %v708_v41 }
 0x745   :  { %v1049_v48 = vpop.eup %1048 }
 0x746   :  { %v710_v42 = vsel %vm158_vm5, %v1049_v48, 0.0 }
 0x747   :  { %711 = vadd.xlane.f32.xlu0 %v710_v42 }
 0x7ba   :  { %v712_v44 = vpop.xlane.xlu0 %711 }
 0x7bb   :  { %1050 = vrcp.f32 %v712_v44  ;;  %v724_v40 = vand.u32 2147483648, %v712_v44  ;;  %v722_v51 = vand.u32 2147483647, %v712_v44  ;;  %vm718_vm4 = vweird.f32 %v712_v44 }
 0x7bd   :  { %v725_v53 = vor.u32 1.1754944e-38, %v724_v40  ;;  %vm723_vm7 = vcmp.eq.f32.partialorder %v722_v51, 8.507059e+37  ;;  %v899_v51 = vld [vmem:[%s1501_s10 + $0x50] sm:$0xff] }
 0x7c1   :  { %v1051_v45 = vpop.eup %1050 }
 0x7c2   :  { %v714_v47 = vmul.f32 %v1051_v45, %v712_v44  ;;  %vm719_vm3 = vweird.f32 %v1051_v45 }
 0x7c3   :  { %vm720_vm6 = vmor %vm718_vm4, %vm719_vm3 }
 0x7c4   :  { %v715_v49 = vsub.f32 1.0, %v714_v47 }
 0x7c6   :  { %v716_v50 = vmul.f32 %v1051_v45, %v715_v49 }
 0x7c8   :  { %v717_v52 = vadd.f32 %v1051_v45, %v716_v50  ;;  %v900_v50 = vld [vmem:[%s1501_s10 + $0x58] sm:$0xff] }
 0x7ca   :  { %v721_v54 = vsel %vm720_vm6, %v1051_v45, %v717_v52  ;;  %v898_v52 = vld [vmem:[%s1501_s10 + $0x48] sm:$0xff] }
 0x7cb   :  { %v726_v55 = vsel %vm723_vm7, %v725_v53, %v721_v54  ;;  %v895_v53 = vld [vmem:[%s1501_s10 + $0x30] sm:$0xff]  ;;  %v894_v54 = vld [vmem:[%s1501_s10 + $0x28] sm:$0xff] }
 0x7cc   :  { %v727_v56 = vmul.f32 %v1049_v48, %v726_v55  ;;  %v893_v55 = vld [vmem:[%s1501_s10 + $0x20] sm:$0xff] }
 0x7ce   :  { %1018 = vmatmul.msk.f32.vlgmr.msrb.gmra.mxu1 %vm158_vm5, %v727_v56  ;;  %v892_v56 = vld [vmem:[%s1501_s10 + $0x18] sm:$0xff] }
 0x84b   :  { %v748_v58 = vpop.f32.mrf.mxu1 }
 0x84c   :  { %1020 = vmatmul.msk.f32.vlgmr.msra.gmra.mxu2 %vm158_vm5, %v748_v58  ;;  %v890_v58 = vld [vmem:[%s1501_s10 + $0x8] sm:$0xff] }
 0x8cf   :  { %v773_v60 = vpop.f32.mrf.mxu2 }
 0x8d0   :  { %v776_v61 = vadd.f32 %v773_v60, %v602_v35  ;;  %v1030_v60 = vld [vmem:[%s1500_s9] ss:$0 sm:$0xff] }
 0x8d2   :  { %v781_v63 = vadd.f32 %v1029_v59, %v776_v61  ;;  %v889_v59 = vld [vmem:[%s1501_s10] sm:$0xff] }
 0x8d4   :  { %v1396_v1 = vadd.f32 %v781_v63, %v1158_v0  ;;  %v1398_v2 = vadd.f32 %v783_v62, %v781_v63 }
 0x8d6   :  { %v789_v3 = vsel %vm45_vm0, %v1398_v2, 0.0  ;;  %v786_v4 = vsel %vm45_vm0, %v1396_v1, 0.0 }
 0x8d7   :  { %790 = vadd.xlane.f32.xlu2 %v789_v3  ;;  %787 = vadd.xlane.f32.xlu1 %v786_v4 }
 0x94a   :  { %v791_v5 = vpop.xlane.xlu2 %790  ;;  %v788_v6 = vpop.xlane.xlu1 %787 }
 0x94b   :  { %v793_v7 = vmul.f32 %v791_v5, %v1162_v8  ;;  %v792_v9 = vmul.f32 %v788_v6, %v1162_v8 }
 0x94d   :  { %v795_v10 = vsub.f32 %v1398_v2, %v793_v7  ;;  %v794_v0 = vsub.f32 %v1396_v1, %v792_v9 }
 0x94f   :  { %v797_v11 = vmul.f32 %v795_v10, %v795_v10  ;;  %v796_v12 = vmul.f32 %v794_v0, %v794_v0 }
 0x951   :  { %v801_v13 = vsel %vm45_vm0, %v797_v11, 0.0  ;;  %v798_v14 = vsel %vm45_vm0, %v796_v12, 0.0 }
 0x952   :  { %802 = vadd.xlane.f32.xlu1 %v801_v13  ;;  %799 = vadd.xlane.f32.xlu0 %v798_v14 }
 0x9c5   :  { %v800_v19 = vpop.xlane.xlu0 %799  ;;  %v803_v20 = vpop.xlane.xlu1 %802 }
 0x9c6   :  { %v804_v21 = vmul.f32 %v800_v19, %v1162_v8  ;;  %v805_v22 = vmul.f32 %v803_v20, %v1162_v8  ;;  %v901_v8 = vld [vmem:[%s1501_s10 + $0x60] sm:$0xff] }
 0x9c7   :  { %912 = vmatpush.msrb.mxu0 %v901_v8 }
 0x9c8   :  { %v806_v23 = vadd.f32 1e-05, %v804_v21  ;;  %v807_v24 = vadd.f32 1e-05, %v805_v22  ;;  %v1031_v22 = vld [vmem:[%s1502_s11] ss:$0 sm:$0xff] }
 0x9c9   :  { %913 = vmatpush.msrb.mxu0 %v900_v50  ;;  %s1088_s11 = smov 128  }
 0x9ca   :  { %1052 = vrsqrt.f32 %v806_v23  ;;  %vm814_vm8 = vweird.f32 %v806_v23  ;;  %vm824_vm11 = vweird.f32 %v807_v24 }
 0x9cb   :  { %1054 = vrsqrt.f32 %v807_v24  ;;  %914 = vmatpush.msrb.mxu0 %v899_v51 }
 0x9cd   :  { %915 = vmatpush.msrb.mxu0 %v898_v52 }
 0x9d0   :  { %v1053_v28 = vpop.eup %1052 }
 0x9d1   :  { %v1055_v29 = vpop.eup %1054  ;;  %v809_v30 = vmul.f32 %v1053_v28, %v806_v23  ;;  %vm815_vm5 = vweird.f32 %v1053_v28 }
 0x9d2   :  { %v819_v31 = vmul.f32 %v1055_v29, %v807_v24  ;;  %vm825_vm9 = vweird.f32 %v1055_v29  ;;  %vm816_vm10 = vmor %vm814_vm8, %vm815_vm5 }
 0x9d3   :  { %v810_v32 = vmul.f32 %v1053_v28, %v809_v30  ;;  %vm826_vm12 = vmor %vm824_vm11, %vm825_vm9 }
 0x9d4   :  { %v820_v33 = vmul.f32 %v1055_v29, %v819_v31 }
 0x9d5   :  { %v811_v34 = vmul.f32 0.5, %v810_v32 }
 0x9d6   :  { %v821_v35 = vmul.f32 0.5, %v820_v33 }
 0x9d7   :  { %v812_v36 = vsub.f32 1.5, %v811_v34 }
 0x9d8   :  { %v822_v37 = vsub.f32 1.5, %v821_v35 }
 0x9d9   :  { %v813_v38 = vmul.f32 %v1053_v28, %v812_v36 }
 0x9da   :  { %v823_v39 = vmul.f32 %v1055_v29, %v822_v37 }
 0x9db   :  { %v817_v41 = vsel %vm816_vm10, %v1053_v28, %v813_v38 }
 0x9dc   :  { %v828_v48 = vmul.f32 %v817_v41, %v794_v0  ;;  %v827_v42 = vsel %vm826_vm12, %v1055_v29, %v823_v39 }
 0x9dd   :  { %v829_v47 = vmul.f32 %v827_v42, %v795_v10 }
 0x9de   :  { %v830_v44 = vmul.f32 %v1231_v43, %v828_v48 }
 0x9df   :  { %v831_v49 = vmul.f32 %v1231_v43, %v829_v47  ;;  %v897_v43 = vld [vmem:[%s1501_s10 + $0x40] sm:$0xff] }
 0x9e0   :  { %v832_v45 = vadd.f32 %v1236_v46, %v830_v44  ;;  %916 = vmatpush.msrb.mxu0 %v897_v43 }
 0x9e1   :  { %v833_v40 = vadd.f32 %v1236_v46, %v831_v49  ;;  %v896_v46 = vld [vmem:[%s1501_s10 + $0x38] sm:$0xff] }
 0x9e2   :  { %1021 = vmatmul.msk.f32.vlgmr.msra.gmra.mxu3 %vm45_vm0, %v832_v45  ;;  %917 = vmatpush.msrb.mxu0 %v896_v46 }
 0x9e4   :  { %918 = vmatpush.msrb.mxu0 %v895_v53 }
 0x9e6   :  { %919 = vmatpush.msrb.mxu0 %v894_v54 }
 0x9e8   :  { %920 = vmatpush.msrb.mxu0 %v893_v55 }
 0x9ea   :  { %1022 = vmatmul.msk.f32.gmra.mxu3 %vm45_vm0, %v833_v40  ;;  %921 = vmatpush.msrb.mxu0 %v892_v56 }
 0x9ec   :  { %922 = vmatpush.msrb.mxu0 %v891_v57 }
 0x9ee   :  { %923 = vmatpush.msrb.mxu0 %v890_v58 }
 0x9f0   :  { %924 = vmatpush.msrb.mxu0 %v889_v59 }
 0xa65   :  { %v865_v61 = vpop.f32.mrf.mxu3 }
 0xa66   :  { %v866_v62 = vadd.f32 %v1030_v60, %v865_v61 }
 0xa68   :  { %v873_v63 = vmul.f32 %v866_v62, %v866_v62  ;;  %v871_v15 = vmul.f32 0.5, %v866_v62 }
 0xa6a   :  { %v875_v3 = vmul.f32 %v873_v63, %v866_v62 }
 0xa6c   :  { %v877_v4 = vmul.f32 0.044715, %v875_v3 }
 0xa6d   :  { %v868_v5 = vpop.f32.mrf.mxu3 }
 0xa6e   :  { %v879_v6 = vadd.f32 %v877_v4, %v866_v62  ;;  %v869_v7 = vadd.f32 %v1030_v60, %v868_v5 }
 0xa70   :  { %v881_v9 = vmul.f32 0.7978846, %v879_v6  ;;  %v874_v10 = vmul.f32 %v869_v7, %v869_v7  ;;  %v872_v19 = vmul.f32 0.5, %v869_v7 }
 0xa72   :  { %1056 = vtanh.f32 %v881_v9  ;;  %v876_v0 = vmul.f32 %v874_v10, %v869_v7 }
 0xa74   :  { %v878_v11 = vmul.f32 0.044715, %v876_v0 }
 0xa76   :  { %v880_v12 = vadd.f32 %v878_v11, %v869_v7 }
 0xa78   :  { %v1057_v13 = vpop.eup %1056  ;;  %v882_v14 = vmul.f32 0.7978846, %v880_v12 }
 0xa79   :  { %v885_v16 = vadd.f32 1.0, %v1057_v13 }
 0xa7a   :  { %1058 = vtanh.f32 %v882_v14 }
 0xa7b   :  { %v887_v17 = vmul.f32 %v885_v16, %v871_v15 }
 0xa7d   :  { %925 = vmatmul.f32.vlgmr.msrb.gmra.mxu0 %v887_v17 }
 0xa80   :  { %v1059_v18 = vpop.eup %1058 }
 0xa81   :  { %v886_v20 = vadd.f32 1.0, %v1059_v18 }
 0xa83   :  { %v888_v21 = vmul.f32 %v886_v20, %v872_v19 }
 0xa85   :  { %928 = vmatmul.f32.gmra.mxu0 %v888_v21 }
 0xafa   :  { %v926_v23 = vpop.f32.mrf.mxu0 }
 0xafb   :  { %v927_v24 = vadd.f32 %v1031_v22, %v926_v23 }
 0xafd   :  { %v932_v25 = vadd.f32 %v927_v24, %v1396_v1 }
 0xaff   :  { %934 = vst.msk [vmem:[#allocation2] sm:$0xff] %vm45_vm0, %v932_v25 }
 0xb02   :  { %v929_v26 = vpop.f32.mrf.mxu0 }
 0xb03   :  { %v930_v27 = vadd.f32 %v1031_v22, %v929_v26 }
 0xb05   :  { %v933_v8 = vadd.f32 %v930_v27, %v1398_v2 }
 0xb07   :  { %935 = vst.msk [vmem:[#allocation2 + $0x8] sm:$0xff] %vm45_vm0, %v933_v8 }
 0xb08   :  { %948 = dma.vmem_to_hbm [thread:$0]  %s941_s26, 256, %s943_s28, [#allocation3], %s1088_s11, %s1088_s11, %s1089_s29  }
 0xb09   :  { %1084 = dma.done.wait [#allocation3], 256  }
 0xb0a   :  { %1085 = vsyncadd [#allocation3], 4294967040 }
 0xb0b   :  { %953 = vsyncpa [#allocation3], 1 }

</bundles_post_ra>
